<compile_context>
chip_gen: v7x
topology: tpu7x:2x2x1
jax: 0.10.0
libtpu: 0.0.40
codegen_flags: <defaults>
</compile_context>

<pallas_src>
import jax
import jax.numpy as jnp
import numpy as np
from jax.experimental import pallas as pl
from jax.experimental.pallas import tpu as pltpu


def _round_up(x, m):
    return (x + m - 1) // m * m


def _p3_partials_kernel(preds_ref, labs_ref, cen_ref, out_ref):
    """Accumulate per-lab-set partial sums for one (T, TILE_N) slab of examples.

    preds_ref : [T, TILE_N] float  (time bins on sublanes, examples on lanes)
    labs_ref  : [L, TILE_N] int32
    cen_ref   : [L, TILE_N] int32  (0 = observed, 1 = censored, 2 = padding)
    out_ref   : [4*L, TILE_N] f32  resident accumulator; rows per lab set l:
                4l+0 uncensored -log terms, 4l+1 censored -log terms,
                4l+2 uncensored count,      4l+3 censored count
    """
    @pl.when(pl.program_id(1) == 0)
    def _init():
        out_ref[...] = jnp.zeros_like(out_ref)

    preds = preds_ref[...].astype(jnp.float32)            # [T, TN]
    T, TN = preds.shape
    L = labs_ref.shape[0]

    row_ids = jax.lax.broadcasted_iota(jnp.int32, (T, TN), 0)
    eps = jnp.float32(1e-10)

    rows = []
    for l in range(L):                                    # L tiny & static -> unrolled
        lab = labs_ref[l:l + 1, :]                        # [1, TN] i32
        cen = cen_ref[l:l + 1, :]                         # [1, TN] i32
        is_cen = cen == 1
        is_unc = cen == 0

        # gather preds[j, lab_j] via one-hot select (no data-dependent gather on TPU)
        gather_val = jnp.sum(jnp.where(row_ids == lab, preds, 0.0),
                             axis=0, keepdims=True)       # [1, TN]

        # censored tail sum_{k>lab} preds[j,k]; 1e-10 epsilon applied as [1,TN] FMA
        tail_pred = jnp.sum(jnp.where(row_ids > lab, preds, 0.0),
                            axis=0, keepdims=True)        # [1, TN]
        n_tail = (T - 1 - lab).astype(jnp.float32)
        tail_sum = tail_pred + n_tail * eps
        # NOTE: censored row with lab == T-1 gives tail_sum == 0 -> -log(0) = +inf,
        # which matches the PyTorch reference behavior exactly.

        # single log per example: select the argument, then one transcendental
        arg = jnp.where(is_cen, tail_sum, gather_val + eps)
        term = -jnp.log(arg)                              # [1, TN]

        rows.append(jnp.where(is_unc, term, 0.0))
        rows.append(jnp.where(is_cen, term, 0.0))
        rows.append(is_unc.astype(jnp.float32))
        rows.append(is_cen.astype(jnp.float32))

    out_ref[...] += jnp.concatenate(rows, axis=0)         # [4L, TN]


def proposed3_loss_forward(preds, labs, cen_in, *, cen_weight,
                           tile_n=512, num_splits=2):
    """preds: [N, T] float probabilities; labs, cen_in: [N, L] int."""
    N, T = preds.shape
    L = labs.shape[1]

    # Lane-dense layout: examples on lanes.  (If the upstream producer can emit
    # [T, N] / bf16 preds directly, these transposes/casts become free.)
    preds_t = jnp.asarray(preds).T                        # [T, N]
    labs_t = jnp.asarray(labs).astype(jnp.int32).T        # [L, N]
    cen_t = jnp.asarray(cen_in).astype(jnp.int32).T       # [L, N]

    # Tile sizing: multiple of 128 lanes; keep the double-buffered preds slab
    # under ~12 MiB so it fits every generation's scoped-VMEM defaults.
    tile_n = max(128, min(int(tile_n), _round_up(N, 128)))
    vmem_cap = max(128, ((12 * 1024 * 1024) // (2 * 4 * T)) // 128 * 128)
    tile_n = min(tile_n, vmem_cap)

    n_pad = _round_up(N, tile_n * num_splits)
    pad = n_pad - N
    if pad:
        preds_t = jnp.pad(preds_t, ((0, 0), (0, pad)))
        labs_t = jnp.pad(labs_t, ((0, 0), (0, pad)))
        # cen == 2 marks padding: neither censored nor uncensored, so padded
        # columns contribute nothing to sums or counts.
        cen_t = jnp.pad(cen_t, ((0, 0), (0, pad)), constant_values=2)

    nb_per_split = n_pad // (tile_n * num_splits)
    col_map = lambda c, i: (0, c * nb_per_split + i)

    cost = pl.CostEstimate(
        flops=8 * T * L * n_pad,
        transcendentals=L * n_pad,
        bytes_accessed=4 * n_pad * (T + 2 * L) + 4 * num_splits * 4 * L * tile_n,
    )

    partials = pl.pallas_call(
        _p3_partials_kernel,
        out_shape=jax.ShapeDtypeStruct((num_splits, 4 * L, tile_n), jnp.float32),
        grid=(num_splits, nb_per_split),
        in_specs=[
            pl.BlockSpec((T, tile_n), col_map),
            pl.BlockSpec((L, tile_n), col_map),
            pl.BlockSpec((L, tile_n), col_map),
        ],
        out_specs=pl.BlockSpec((None, 4 * L, tile_n), lambda c, i: (c, 0, 0)),
        compiler_params=pltpu.CompilerParams(
            dimension_semantics=("parallel", "arbitrary"),
            vmem_limit_bytes=32 * 1024 * 1024,
        ),
        cost_estimate=cost,
    )(preds_t, labs_t, cen_t)

    # O(L) global finalize — must run after all N blocks and both TC splits,
    # because the per-lab-set normalization uses global counts.
    sums = jnp.sum(partials, axis=(0, 2)).reshape(L, 4)
    uncen_sum, cen_sum = sums[:, 0], sums[:, 1]
    n_unc, n_cen = sums[:, 2], sums[:, 3]
    num_ex = n_unc + n_cen
    uncen_loss = uncen_sum / jnp.maximum(n_unc, 1.0)
    cen_loss = cen_sum / jnp.maximum(n_cen, 1.0)
    lab_loss = (n_unc / num_ex) * uncen_loss \
             + (n_cen / num_ex) * cen_loss * jnp.float32(cen_weight)
    return jnp.sum(lab_loss)


def _reference_forward(preds, labs, cen_in, cen_weight):
    """Pure-numpy mirror of the PyTorch forward_lab loop, for verification."""
    preds = np.asarray(preds, np.float64)
    labs = np.asarray(labs)
    cen_in = np.asarray(cen_in)
    N, T = preds.shape
    L = labs.shape[1]
    total = 0.0
    for l in range(L):
        lab = labs[:, l]
        cen = cen_in[:, l]
        uncensored = np.where(cen == 0)[0]
        censored = np.where(cen == 1)[0]
        num_uncen, num_cen = len(uncensored), len(censored)
        num_ex = num_uncen + num_cen
        uncen_loss = 0.0
        if num_uncen > 0:
            g = preds[uncensored, lab[uncensored]]
            uncen_loss = -np.sum(np.log(g + 1e-10)) / max(num_uncen, 1)
        cen_loss = 0.0
        if num_cen > 0:
            for i in np.unique(lab[censored]):
                rows = censored[lab[censored] == i]
                tail = np.sum(preds[rows, int(i) + 1:] + 1e-10, axis=1)
                cen_loss += np.sum(-np.log(tail)) / max(num_cen, 1)
        total += num_uncen / num_ex * uncen_loss \
               + num_cen / num_ex * cen_loss * cen_weight
    return total


if __name__ == "__main__":
    # hyperparams (deterministic, in-script)
    hyperparams = {"cen_weight": 0.5, "exp_weight": 1.0, "ent_weight": 0.1}

    # small shapes; N chosen so the gridded kernel exercises multiple N blocks,
    # both TC splits and lane padding (tile_n=128 -> n_pad=512, grid=(2, 2))
    N, T, L = 300, 16, 2  # examples, time bins, number of lab sets

    key = jax.random.PRNGKey(0)
    k1, k2, k3 = jax.random.split(key, 3)

    logits = jax.random.normal(k1, (N, T), dtype=jnp.float32)
    preds = jax.nn.softmax(logits, axis=-1)                            # [N, T] probs
    labs = jax.random.randint(k2, (N, L), 0, T - 1, dtype=jnp.int32)   # [N, L]
    cen_in = jax.random.randint(k3, (N, L), 0, 2, dtype=jnp.int32)     # [N, L]

    loss = proposed3_loss_forward(preds, labs, cen_in,
                                  cen_weight=hyperparams["cen_weight"],
                                  tile_n=128)
    loss = jax.block_until_ready(loss)

    ref = _reference_forward(np.array(preds), np.array(labs), np.array(cen_in),
                             hyperparams["cen_weight"])
    np.testing.assert_allclose(float(loss), ref, rtol=1e-4, atol=1e-5)

    print("KERNEL_OK")
</pallas_src>

<mosaic_0001>
module attributes {stable_mosaic.version = 11 : i64} {
  func.func @_p3_partials_kernel(%arg0: i32, %arg1: i32, %arg2: memref<16x128xf32, #tpu.memory_space<vmem>>, %arg3: memref<2x128xi32, #tpu.memory_space<vmem>>, %arg4: memref<2x128xi32, #tpu.memory_space<vmem>>, %arg5: memref<1x8x128xf32, #tpu.memory_space<vmem>>) attributes {dimension_semantics = [#tpu.dimension_semantics<parallel>, #tpu.dimension_semantics<arbitrary>], iteration_bounds = array<i64: 2, 2>, scalar_prefetch = 0 : i64, scratch_operands = 0 : i64, tpu.core_type = #tpu.core_type<tc>, window_params = [{transform_indices = @transform_0, window_bounds = array<i64: 16, 128>}, {transform_indices = @transform_1, window_bounds = array<i64: 2, 128>}, {transform_indices = @transform_2, window_bounds = array<i64: 2, 128>}, {transform_indices = @transform_3, window_bounds = array<i64: 1, 8, 128>}]} {
    %c0_i32 = arith.constant 0 : i32
    %0 = arith.cmpi eq, %arg1, %c0_i32 : i32
    %1 = arith.extui %0 : i1 to i32
    %c0_i32_0 = arith.constant 0 : i32
    %2 = arith.cmpi ne, %1, %c0_i32_0 : i32
    scf.if %2 {
      %cst_36 = arith.constant 0.000000e+00 : f32
      %88 = vector.broadcast %cst_36 : f32 to vector<8x128xf32>
      %c0_37 = arith.constant 0 : index
      %c0_38 = arith.constant 0 : index
      %c0_39 = arith.constant 0 : index
      %89 = vector.load %arg5[%c0_37, %c0_38, %c0_39] : memref<1x8x128xf32, #tpu.memory_space<vmem>>, vector<1x8x128xf32>
      %90 = vector.shape_cast %89 : vector<1x8x128xf32> to vector<8x128xf32>
      %91 = vector.shape_cast %88 : vector<8x128xf32> to vector<1x8x128xf32>
      tpu.vector_store %arg5[%c0_37, %c0_38, %c0_39], %91 {strides = array<i32>} : memref<1x8x128xf32, #tpu.memory_space<vmem>>, vector<1x8x128xf32>,
    } else {
    }
    %c0 = arith.constant 0 : index
    %c0_1 = arith.constant 0 : index
    %3 = vector.load %arg2[%c0, %c0_1] : memref<16x128xf32, #tpu.memory_space<vmem>>, vector<16x128xf32>
    %4 = tpu.iota {dimensions = array<i32: 0>} : vector<16x128xi32>
    %c0_2 = arith.constant 0 : index
    %c0_3 = arith.constant 0 : index
    %5 = vector.load %arg3[%c0_2, %c0_3] : memref<2x128xi32, #tpu.memory_space<vmem>>, vector<1x128xi32>
    %c0_4 = arith.constant 0 : index
    %c0_5 = arith.constant 0 : index
    %6 = vector.load %arg4[%c0_4, %c0_5] : memref<2x128xi32, #tpu.memory_space<vmem>>, vector<1x128xi32>
    %c1_i32 = arith.constant 1 : i32
    %7 = vector.broadcast %c1_i32 : i32 to vector<1x128xi32>
    %8 = arith.cmpi eq, %6, %7 : vector<1x128xi32>
    %c0_i32_6 = arith.constant 0 : i32
    %9 = vector.broadcast %c0_i32_6 : i32 to vector<1x128xi32>
    %10 = arith.cmpi eq, %6, %9 : vector<1x128xi32>
    %11 = vector.broadcast %5 : vector<1x128xi32> to vector<16x128xi32>
    %12 = arith.cmpi eq, %4, %11 : vector<16x128xi32>
    %cst = arith.constant 0.000000e+00 : f32
    %13 = vector.broadcast %cst : f32 to vector<16x128xf32>
    %14 = arith.select %12, %3, %13 : vector<16x128xi1>, vector<16x128xf32>
    %cst_7 = arith.constant dense<0.000000e+00> : vector<128xf32>
    %15 = vector.multi_reduction <add>, %14, %cst_7 [0] : vector<16x128xf32> to vector<128xf32>
    %16 = vector.shape_cast %15 : vector<128xf32> to vector<1x128xf32>
    %17 = vector.broadcast %5 : vector<1x128xi32> to vector<16x128xi32>
    %18 = arith.cmpi sgt, %4, %17 : vector<16x128xi32>
    %cst_8 = arith.constant 0.000000e+00 : f32
    %19 = vector.broadcast %cst_8 : f32 to vector<16x128xf32>
    %20 = arith.select %18, %3, %19 : vector<16x128xi1>, vector<16x128xf32>
    %cst_9 = arith.constant dense<0.000000e+00> : vector<128xf32>
    %21 = vector.multi_reduction <add>, %20, %cst_9 [0] : vector<16x128xf32> to vector<128xf32>
    %22 = vector.shape_cast %21 : vector<128xf32> to vector<1x128xf32>
    %c15_i32 = arith.constant 15 : i32
    %23 = vector.broadcast %c15_i32 : i32 to vector<1x128xi32>
    %24 = arith.subi %23, %5 : vector<1x128xi32>
    %25 = arith.sitofp %24 : vector<1x128xi32> to vector<1x128xf32>
    %cst_10 = arith.constant 1.000000e-10 : f32
    %26 = vector.broadcast %cst_10 : f32 to vector<1x128xf32>
    %27 = arith.mulf %25, %26 : vector<1x128xf32>
    %28 = arith.addf %22, %27 : vector<1x128xf32>
    %cst_11 = arith.constant 1.000000e-10 : f32
    %29 = vector.broadcast %cst_11 : f32 to vector<1x128xf32>
    %30 = arith.addf %16, %29 : vector<1x128xf32>
    %31 = arith.select %8, %28, %30 : vector<1x128xi1>, vector<1x128xf32>
    %32 = math.log %31 : vector<1x128xf32>
    %cst_12 = arith.constant 0.000000e+00 : f32
    %33 = vector.broadcast %cst_12 : f32 to vector<1x128xf32>
    %34 = arith.subf %33, %32 : vector<1x128xf32>
    %cst_13 = arith.constant 0.000000e+00 : f32
    %35 = vector.broadcast %cst_13 : f32 to vector<1x128xf32>
    %36 = arith.select %10, %34, %35 : vector<1x128xi1>, vector<1x128xf32>
    %cst_14 = arith.constant 0.000000e+00 : f32
    %37 = vector.broadcast %cst_14 : f32 to vector<1x128xf32>
    %38 = arith.select %8, %34, %37 : vector<1x128xi1>, vector<1x128xf32>
    %39 = arith.extui %10 : vector<1x128xi1> to vector<1x128xi32>
    %40 = arith.sitofp %39 : vector<1x128xi32> to vector<1x128xf32>
    %41 = arith.extui %8 : vector<1x128xi1> to vector<1x128xi32>
    %42 = arith.sitofp %41 : vector<1x128xi32> to vector<1x128xf32>
    %c1 = arith.constant 1 : index
    %c0_15 = arith.constant 0 : index
    %43 = vector.load %arg3[%c1, %c0_15] : memref<2x128xi32, #tpu.memory_space<vmem>>, vector<1x128xi32>
    %c1_16 = arith.constant 1 : index
    %c0_17 = arith.constant 0 : index
    %44 = vector.load %arg4[%c1_16, %c0_17] : memref<2x128xi32, #tpu.memory_space<vmem>>, vector<1x128xi32>
    %c1_i32_18 = arith.constant 1 : i32
    %45 = vector.broadcast %c1_i32_18 : i32 to vector<1x128xi32>
    %46 = arith.cmpi eq, %44, %45 : vector<1x128xi32>
    %c0_i32_19 = arith.constant 0 : i32
    %47 = vector.broadcast %c0_i32_19 : i32 to vector<1x128xi32>
    %48 = arith.cmpi eq, %44, %47 : vector<1x128xi32>
    %49 = vector.broadcast %43 : vector<1x128xi32> to vector<16x128xi32>
    %50 = arith.cmpi eq, %4, %49 : vector<16x128xi32>
    %cst_20 = arith.constant 0.000000e+00 : f32
    %51 = vector.broadcast %cst_20 : f32 to vector<16x128xf32>
    %52 = arith.select %50, %3, %51 : vector<16x128xi1>, vector<16x128xf32>
    %cst_21 = arith.constant dense<0.000000e+00> : vector<128xf32>
    %53 = vector.multi_reduction <add>, %52, %cst_21 [0] : vector<16x128xf32> to vector<128xf32>
    %54 = vector.shape_cast %53 : vector<128xf32> to vector<1x128xf32>
    %55 = vector.broadcast %43 : vector<1x128xi32> to vector<16x128xi32>
    %56 = arith.cmpi sgt, %4, %55 : vector<16x128xi32>
    %cst_22 = arith.constant 0.000000e+00 : f32
    %57 = vector.broadcast %cst_22 : f32 to vector<16x128xf32>
    %58 = arith.select %56, %3, %57 : vector<16x128xi1>, vector<16x128xf32>
    %cst_23 = arith.constant dense<0.000000e+00> : vector<128xf32>
    %59 = vector.multi_reduction <add>, %58, %cst_23 [0] : vector<16x128xf32> to vector<128xf32>
    %60 = vector.shape_cast %59 : vector<128xf32> to vector<1x128xf32>
    %c15_i32_24 = arith.constant 15 : i32
    %61 = vector.broadcast %c15_i32_24 : i32 to vector<1x128xi32>
    %62 = arith.subi %61, %43 : vector<1x128xi32>
    %63 = arith.sitofp %62 : vector<1x128xi32> to vector<1x128xf32>
    %cst_25 = arith.constant 1.000000e-10 : f32
    %64 = vector.broadcast %cst_25 : f32 to vector<1x128xf32>
    %65 = arith.mulf %63, %64 : vector<1x128xf32>
    %66 = arith.addf %60, %65 : vector<1x128xf32>
    %cst_26 = arith.constant 1.000000e-10 : f32
    %67 = vector.broadcast %cst_26 : f32 to vector<1x128xf32>
    %68 = arith.addf %54, %67 : vector<1x128xf32>
    %69 = arith.select %46, %66, %68 : vector<1x128xi1>, vector<1x128xf32>
    %70 = math.log %69 : vector<1x128xf32>
    %cst_27 = arith.constant 0.000000e+00 : f32
    %71 = vector.broadcast %cst_27 : f32 to vector<1x128xf32>
    %72 = arith.subf %71, %70 : vector<1x128xf32>
    %cst_28 = arith.constant 0.000000e+00 : f32
    %73 = vector.broadcast %cst_28 : f32 to vector<1x128xf32>
    %74 = arith.select %48, %72, %73 : vector<1x128xi1>, vector<1x128xf32>
    %cst_29 = arith.constant 0.000000e+00 : f32
    %75 = vector.broadcast %cst_29 : f32 to vector<1x128xf32>
    %76 = arith.select %46, %72, %75 : vector<1x128xi1>, vector<1x128xf32>
    %77 = arith.extui %48 : vector<1x128xi1> to vector<1x128xi32>
    %78 = arith.sitofp %77 : vector<1x128xi32> to vector<1x128xf32>
    %79 = arith.extui %46 : vector<1x128xi1> to vector<1x128xi32>
    %80 = arith.sitofp %79 : vector<1x128xi32> to vector<1x128xf32>
    %c0_30 = arith.constant 0 : index
    %c0_31 = arith.constant 0 : index
    %c0_32 = arith.constant 0 : index
    %81 = vector.load %arg5[%c0_30, %c0_31, %c0_32] : memref<1x8x128xf32, #tpu.memory_space<vmem>>, vector<1x8x128xf32>
    %82 = vector.shape_cast %81 : vector<1x8x128xf32> to vector<8x128xf32>
    %83 = tpu.concatenate %36, %38, %40, %42, %74, %76, %78, %80 in 0 : vector<1x128xf32>, vector<1x128xf32>, vector<1x128xf32>, vector<1x128xf32>, vector<1x128xf32>, vector<1x128xf32>, vector<1x128xf32>, vector<1x128xf32> -> vector<8x128xf32>
    %84 = arith.addf %82, %83 : vector<8x128xf32>
    %c0_33 = arith.constant 0 : index
    %c0_34 = arith.constant 0 : index
    %c0_35 = arith.constant 0 : index
    %85 = vector.load %arg5[%c0_33, %c0_34, %c0_35] : memref<1x8x128xf32, #tpu.memory_space<vmem>>, vector<1x8x128xf32>
    %86 = vector.shape_cast %85 : vector<1x8x128xf32> to vector<8x128xf32>
    %87 = vector.shape_cast %84 : vector<8x128xf32> to vector<1x8x128xf32>
    tpu.vector_store %arg5[%c0_33, %c0_34, %c0_35], %87 {strides = array<i32>} : memref<1x8x128xf32, #tpu.memory_space<vmem>>, vector<1x8x128xf32>,
    return
  }
  func.func @transform_0(%arg0: i32, %arg1: i32) -> (i32, i32) {
    %c2_i32 = arith.constant 2 : i32
    %0 = arith.muli %arg0, %c2_i32 : i32
    %1 = arith.addi %0, %arg1 : i32
    %c0_i32 = arith.constant 0 : i32
    %c0_i32_0 = arith.constant 0 : i32
    return %c0_i32, %1 : i32, i32
  }
  func.func @transform_1(%arg0: i32, %arg1: i32) -> (i32, i32) {
    %c2_i32 = arith.constant 2 : i32
    %0 = arith.muli %arg0, %c2_i32 : i32
    %1 = arith.addi %0, %arg1 : i32
    %c0_i32 = arith.constant 0 : i32
    %c0_i32_0 = arith.constant 0 : i32
    return %c0_i32, %1 : i32, i32
  }
  func.func @transform_2(%arg0: i32, %arg1: i32) -> (i32, i32) {
    %c2_i32 = arith.constant 2 : i32
    %0 = arith.muli %arg0, %c2_i32 : i32
    %1 = arith.addi %0, %arg1 : i32
    %c0_i32 = arith.constant 0 : i32
    %c0_i32_0 = arith.constant 0 : i32
    return %c0_i32, %1 : i32, i32
  }
  func.func @transform_3(%arg0: i32, %arg1: i32) -> (i32, i32, i32) {
    %c0_i32 = arith.constant 0 : i32
    %c0_i32_0 = arith.constant 0 : i32
    %c0_i32_1 = arith.constant 0 : i32
    return %arg0, %c0_i32, %c0_i32_0 : i32, i32, i32
  }
}

</mosaic_0001>

<bundles_post_ra>
// kernel: tpu_custom_call.1
= control target key start
LH: loop header
LB: loop body
LE: loop exit
PB: predicated region body
PF: predicated region fallthrough
CT: control target
= control target key end

     0   :  { %s1305_s0 = inlined_call_operand.hbm [shape: f32[16,512], index: 0, kind: input, shape index: {}]   ;;  %s1306_s1 = inlined_call_operand.hbm [shape: s32[2,512], index: 1, kind: input, shape index: {}]   ;;  %s1307_s2 = inlined_call_operand.hbm [shape: s32[2,512], index: 2, kind: input, shape index: {}]   ;;  %s1308_s3 = inlined_call_operand.hbm [shape: f32[2,8,128], index: 3, kind: output, shape index: {}]  }
   0x1   :  { %1321 = sst [smem:[#allocation22_spill]] %s1305_s0 }
   0x2   :  { %1322 = sst [smem:[#allocation23_spill]] %s1306_s1 }
   0x3   :  { %8 = vsyncpa [#allocation3], 0 }
   0x4   :  { %10 = vsyncpa [#allocation3 + $0x1], 0 }
   0x5   :  { %11 = vsyncpa [#allocation6], 0 }
   0x6   :  { %13 = vsyncpa [#allocation6 + $0x1], 0 }
   0x7   :  { %14 = vsyncpa [#allocation4], 0 }
   0x8   :  { %16 = vsyncpa [#allocation4 + $0x1], 0  ;;  %s978_s12 = smov 0   ;;  %s980_s13 = smov 0  }
   0x9   :  { %s982_s14 = smov 0   ;;  %s984_s15 = smov 0  }
   0xa   :  { %s986_s16 = smov 0   ;;  %s988_s17 = smov 0  }
   0xb   :  { %s990_s18 = smov 0   ;;  %s992_s19 = smov 0  }
   0xc   :  { %s994_s20 = smov 0   ;;  %s996_s21 = smov 0  }
   0xd   :  { %s998_s22 = smov 0  }
   0xe LB: > { %1323 = sst [smem:[#allocation12_spill]] %s907_s12  ;;  %s1032_s23 = sadd.s32 4294967295, %s947_s22   ;;  %s947_s22 = sphi %s998_s22, %s22_s22   ;;  %s943_s21 = sphi %s996_s21, %s1357_s21   ;;  %s939_s20 = sphi %s994_s20, %s1356_s20   ;;  %s935_s19 = sphi %s992_s19, %s1355_s19   ;;  %s931_s18 = sphi %s990_s18, %s1354_s18   ;;  %s927_s17 = sphi %s988_s17, %s1353_s17   ;;  %s923_s16 = sphi %s986_s16, %s1361_s16   ;;  %s919_s15 = sphi %s984_s15, %s1360_s15   ;;  %s915_s14 = sphi %s982_s14, %s1351_s14   ;;  %s911_s13 = sphi %s980_s13, %s1359_s13   ;;  %s907_s12 = sphi %s978_s12, %s1358_s12  }
   0xf   : > { %1324 = sst [smem:[#allocation13_spill]] %s915_s14  ;;  %s578_s24 = sadd.s32 4294967294, %s947_s22  }
  0x10   : > { %1325 = sst [smem:[#allocation14_spill]] %s927_s17  ;;  %s31_s25 = sadd.s32 1, %s939_s20 }
  0x11   : > { %1326 = sst [smem:[#allocation15_spill]] %s939_s20  ;;  %s34_s26 = sadd.s32 1, %s943_s21 }
  0x12   : > { %1327 = sst [smem:[#allocation16_spill]] %s943_s21  ;;  %p32_p0 = scmp.ge.s32.totalorder %s31_s25, 2 }
  0x13   : > { %s579_s27 = sshll.u32 %s943_s21, 1  ;;  %s45_s29 = sadd.s32 1, %s927_s17 }
  0x14   : > { %s1039_s28 = sadd.s32 %s939_s20, %s579_s27  ;;  %s1363_s25 = smov (%p32_p0, %s31_s25), 0 }
  0x15   : > { %1328 = sst [smem:[#allocation17_spill]] %s1363_s25  ;;  %s1365_s26 = smov (!%p32_p0, %s34_s26), %s943_s21 }
  0x16   : > { %p52_p1 = scmp.ne.s32.totalorder %s927_s17, %s923_s16  ;;  %p53_p2 = scmp.eq.s32.totalorder %s947_s22, 0 }
  0x17   : > { %p36_p3 = scmp.ge.s32.totalorder %s1365_s26, 2  ;;  %p58_p4 = scmp.ne.s32.totalorder %s923_s16, %s919_s15 }
  0x18   : > { %p1049_p5 = por %p53_p2, %p52_p1  ;;  %p59_p6 = scmp.eq.s32.totalorder %s1032_s23, 0 }
  0x19   : > { %s1367_s26 = smov (%p36_p3, %s1365_s26), 0  ;;  %s131_s5 = sadd.s32 1, %s915_s14 }
  0x1a   : > { %1330 = sst [smem:[#allocation18_spill]] %s1367_s26  ;;  %p1056_p7 = por %p59_p6, %p58_p4 }
  0x1b   : > { %s580_s6 = sshll.u32 %s1367_s26, 1  ;;  %s128_s7 = ssub.s32 %s943_s21, %s1367_s26 }
  0x1c   : > { %s1331_s4 = scalar_select %p1056_p7, 1, 0 }
  0x1d   : > { %s41_s8 = sadd.s32 %s580_s6, %s1363_s25  ;;  %p129_p8 = scmp.eq.s32.totalorder %s128_s7, 0 }
  0x1e   : > { %s42_s9 = ssub.s32 %s1039_s28, %s41_s8  ;;  %p141_p9 = scmp.ne.s32.totalorder %s915_s14, %s911_s13 }
  0x1f   : > { %p43_p10 = scmp.eq.s32.totalorder %s42_s9, 0  ;;  %p142_p11 = scmp.eq.s32.totalorder %s1032_s23, 3 }
  0x20   : > { %s1070_s10 = scalar_select %p129_p8, %s915_s14, %s131_s5  }
  0x21   : > { %s1073_s11 = scalar_select %p43_p10, %s927_s17, %s45_s29  }
  0x22   : > { %1332 = sst [smem:[#allocation19_spill]] %s1070_s10  ;;  %p1075_p12 = por %p142_p11, %p141_p9 }
  0x23   : > { %1333 = sst [smem:[#allocation20_spill]] %s1073_s11  ;;  %p147_p13 = scmp.ne.s32.totalorder %s911_s13, %s907_s12 }
  0x24   : > { %s1334_s15 = scalar_select %p1075_p12, 1, 0 }
  0x25   : > { %p148_p0 = scmp.eq.s32.totalorder %s578_s24, 3  ;;  %p632_p1 = scmp.lt.s32.totalorder %s947_s22, 4 }
  0x26   : > { %s1085_s27 = sand.u32 1, %s927_s17   ;;  %s589_s5 = sshll.u32 %s1039_s28, 7 }
  0x27   : > { %p1087_p2 = por %p148_p0, %p147_p13  ;;  %s587_s29 = sshll.u32 %s1085_s27, 4 }
  0x28   : > { %s1337_s0 = sld [smem:[#allocation22_spill]]  ;;  %s172_s26 = scalar_lea.vmem [#allocation2], %s587_s29 }
  0x29   : > { %s1335_s6 = scalar_select %p1087_p2, 1, 0 }
  0x2a   : > { %s180_s25 = sshll.u32 %s172_s26, 4  ;;  %p1100_p3 = pnand %p632_p1, %p1049_p5  ;;  %s1104_s25 = int_to_ptr.vmem [resolvable:$true] %s180_s25 }
  0x2b   : > { %1336 = sst [smem:[#allocation21_spill]] %s1335_s6  ;;  %s190_s21 = sand.u32 1, %s947_s22  }
  0x2c   : > { %s1338_s24 = scalar_select %p1100_p3, 1, 0 }
  0x2d   : > { %s1315_s20 = sshll.u32 %s1085_s27, 1  ;;  %s592_s11 = sshll.u32 %s1039_s28, 5 }
  0x2e   : > { %s1096_s9 = scalar_lea.hbm %s1337_s0, %s589_s5  ;;  %s1339_s1 = sld [smem:[#allocation23_spill]] }
  0x2f   : > { %s194_s26 = scalar_lea.vmem [#allocation5], %s1315_s20  ;;  %s1121_s7 = scalar_lea.hbm %s1307_s2, %s592_s11 }
  0x30   : > { %s203_s30 = sshll.u32 %s194_s26, 4  ;;  %s1123_s28 = scalar_lea.sflag [#allocation6], %s190_s21  ;;  %s1116_s30 = int_to_ptr.vmem [resolvable:$true] %s203_s30 }
  0x31   : > { %p1129_p5 = pneg %p1100_p3 }
  0x34   : > { %s1112_s14 = scalar_lea.hbm %s1339_s1, %s592_s11  ;;  %s736_s20 = scalar_lea.hbm %s1339_s1, 128 }
  0x35   : > { %s731_s8 = scalar_lea.hbm %s1112_s14, 32  ;;  %p737_p9 = scmp.lt.u32.totalorder %s1112_s14, %s1339_s1 }
  0x36   : > { %p732_p4 = scmp.ne.s32.totalorder %s1112_s14, %s731_s8  ;;  %p738_p10 = scmp.lt.u32.totalorder %s736_s20, %s731_s8 }
  0x37   : > { %p740_p13 = scmp.lt.u32.totalorder %s731_s8, %s1112_s14 }
  0x38   : > { %p734_p6 = pnand %p1129_p5, %p732_p4  ;;  %p739_p11 = por %p738_p10, %p737_p9 }
  0x3a   : > { %p735_p8 = pneg %p734_p6  ;;  %p741_p0 = por %p740_p13, %p739_p11 }
  0x3c   : > { %p742_p1 = pnand %p741_p0, %p735_p8 }
  0x3e   : > { %745 = shalt.err (!%p742_p1)
}
  0x3f   : > { %s746_s21 = scalar_lea.vmem %s1116_s30, 32  ;;  %s949_s5 = smov [#allocation5]  }
  0x40   : > { %p747_p4 = scmp.ne.s32.totalorder %s1116_s30, %s746_s21  ;;  %s751_s10 = sshll.u32 %s949_s5, 4  ;;  %s752_s10 = int_to_ptr.vmem [resolvable:$false] %s751_s10 }
  0x41   : > { %s753_s26 = scalar_lea.vmem %s752_s10, 64  ;;  %p754_p12 = scmp.lt.s32.totalorder %s1116_s30, %s752_s10 }
  0x42   : > { %p749_p6 = pnand %p747_p4, %p1129_p5  ;;  %p755_p7 = scmp.lt.s32.totalorder %s753_s26, %s746_s21 }
  0x44   : > { %p750_p2 = pneg %p749_p6  ;;  %p756_p9 = por %p755_p7, %p754_p12 }
  0x46   : > { %p757_p10 = pnand %p756_p9, %p750_p2 }
  0x48   : > { %760 = shalt.err (!%p757_p10)
}
  0x49   : > { %624 = dma.hbm_to_vmem [thread:$0]  (!%p1100_p3), %s1112_s14, 32, %s1116_s30, %s1123_s28  }
  0x4a   : > { %p596_p8 = scmp.ge.s32.totalorder %s947_s22, 1  ;;  %p228_p11 = scmp.lt.s32.totalorder %s947_s22, 5 }
  0x4b   : > { %s169_s8 = scalar_lea.sflag [#allocation3], %s1085_s27  ;;  %s761_s29 = scalar_lea.hbm %s1096_s9, 256 }
  0x4c   : > { %p1155_p13 = pnand %p596_p8, %p228_p11  ;;  %p762_p7 = scmp.ne.s32.totalorder %s1096_s9, %s761_s29 }
  0x4d   : > { %s766_s5 = scalar_lea.hbm %s1337_s0, 1024  ;;  %p767_p0 = scmp.lt.u32.totalorder %s1096_s9, %s1337_s0 }
  0x4e   : > { %s1341_s20 = scalar_select %p1155_p13, 1, 0 }
  0x4f   : > { %p764_p12 = pnand %p762_p7, %p1129_p5  ;;  %p768_p1 = scmp.lt.u32.totalorder %s766_s5, %s761_s29 }
  0x50   : > { %p770_p6 = scmp.lt.u32.totalorder %s761_s29, %s1096_s9 }
  0x51   : > { %p765_p2 = pneg %p764_p12  ;;  %p769_p4 = por %p768_p1, %p767_p0 }
  0x53   : > { %p771_p9 = por %p770_p6, %p769_p4 }
  0x55   : > { %p772_p10 = pnand %p771_p9, %p765_p2 }
  0x57   : > { %775 = shalt.err (!%p772_p10)
}
  0x58   : > { %s776_s14 = scalar_lea.vmem %s1104_s25, 256  ;;  %s950_s30 = smov [#allocation2]  }
  0x59   : > { %p777_p8 = scmp.ne.s32.totalorder %s1104_s25, %s776_s14  ;;  %s781_s11 = sshll.u32 %s950_s30, 4  ;;  %s782_s11 = int_to_ptr.vmem [resolvable:$false] %s781_s11 }
  0x5a   : > { %s783_s21 = scalar_lea.vmem %s782_s11, 512  ;;  %p784_p12 = scmp.lt.s32.totalorder %s1104_s25, %s782_s11 }
  0x5b   : > { %p779_p11 = pnand %p777_p8, %p1129_p5  ;;  %p785_p13 = scmp.lt.s32.totalorder %s783_s21, %s776_s14 }
  0x5d   : > { %p780_p7 = pneg %p779_p11  ;;  %p786_p0 = por %p785_p13, %p784_p12 }
  0x5f   : > { %p787_p1 = pnand %p786_p0, %p780_p7 }
  0x61   : > { %790 = shalt.err (!%p787_p1)
}
  0x62   : > { %s951_s29 = smov 512   ;;  %s952_s5 = smov 128  }
  0x63   : > { %s953_s10 = smov 8   ;;  %s1342_s26 = sshll.u32 %s1085_s27, 1 }
  0x64   : > { %621 = dma.hbm_to_vmem [thread:$0]  (!%p1100_p3), %s1096_s9, 256, %s1104_s25, %s169_s8, %s951_s29, %s952_s5, %s953_s10  }
  0x65   : > { %s214_s14 = scalar_lea.vmem [#allocation7], %s1342_s26  ;;  %s791_s11 = scalar_lea.hbm %s1121_s7, 32 }
  0x66   : > { %s223_s30 = sshll.u32 %s214_s14, 4  ;;  %p792_p13 = scmp.ne.s32.totalorder %s1121_s7, %s791_s11  ;;  %s224_s30 = int_to_ptr.vmem [resolvable:$true] %s223_s30 }
  0x67   : > { %s796_s1 = scalar_lea.hbm %s1307_s2, 128  ;;  %p797_p6 = scmp.lt.u32.totalorder %s1121_s7, %s1307_s2 }
  0x68   : > { %p794_p2 = pnand %p792_p13, %p1129_p5  ;;  %p798_p9 = scmp.lt.u32.totalorder %s796_s1, %s791_s11 }
  0x69   : > { %p800_p8 = scmp.lt.u32.totalorder %s791_s11, %s1121_s7 }
  0x6a   : > { %p795_p4 = pneg %p794_p2  ;;  %p799_p10 = por %p798_p9, %p797_p6 }
  0x6c   : > { %p801_p11 = por %p800_p8, %p799_p10 }
  0x6e   : > { %p802_p7 = pnand %p801_p11, %p795_p4 }
  0x70   : > { %805 = shalt.err (!%p802_p7)
}
  0x71   : > { %s806_s25 = scalar_lea.vmem %s224_s30, 32  ;;  %s954_s27 = smov [#allocation7]  }
  0x72   : > { %p807_p12 = scmp.ne.s32.totalorder %s224_s30, %s806_s25  ;;  %s811_s9 = sshll.u32 %s954_s27, 4  ;;  %s812_s9 = int_to_ptr.vmem [resolvable:$false] %s811_s9 }
  0x73   : > { %s813_s0 = scalar_lea.vmem %s812_s9, 64  ;;  %p814_p13 = scmp.lt.s32.totalorder %s224_s30, %s812_s9 }
  0x74   : > { %p809_p0 = pnand %p807_p12, %p1129_p5  ;;  %p815_p2 = scmp.lt.s32.totalorder %s813_s0, %s806_s25 }
  0x76   : > { %p810_p1 = pneg %p809_p0  ;;  %p816_p3 = por %p815_p2, %p814_p13 }
  0x78   : > { %p817_p6 = pnand %p816_p3, %p810_p1 }
  0x7a   : > { %820 = shalt.err (!%p817_p6)
}
  0x7b   : > { %p1343_p9 = scmp.ne.s32.totalorder %s1338_s24, 0  ;;  %p1344_p4 = scmp.ne.s32.totalorder %s1341_s20, 0 }
  0x7c   : > { %s234_s1 = sand.u32 (!%p1344_p4), 1, %s923_s16   ;;  %p1345_p5 = scmp.ne.s32.totalorder (!%p1344_p4), %s1331_s4, 0 }
  0x7d   : > { %627 = dma.hbm_to_vmem [thread:$0]  (!%p1343_p9), %s1121_s7, 32, %s224_s30, %s1123_s28  }
  0x7e   : > { %232 = sbr.rel (%p1344_p4) target bundleno = 216 (0xd8), region = 32  ;;  %s597_s12 = sshll.u32 (!%p1344_p4), %s234_s1, 4 }
  0x7f   : > { %s235_s6 = scalar_lea.sflag (!%p1344_p4), [#allocation3], %s234_s1  ;;  %s238_s17 = scalar_lea.vmem (!%p1344_p4), [#allocation2], %s597_s12 }
  0x85   : > { %894 = dma.done.wait (%p1345_p5), %s235_s6, 256  }
  0x86   : > { %896 = vsyncadd (%p1345_p5), %s235_s6, 4294967040  ;;  %s243_s24 = sand.u32 1, %s1032_s23   ;;  %s598_s8 = sshll.u32 %s234_s1, 1 }
  0x87   : > { %s244_s29 = scalar_lea.sflag [#allocation6], %s243_s24  ;;  %s247_s7 = scalar_lea.vmem [#allocation5], %s598_s8 }
  0x88   : > { %898 = dma.done.wait (%p1345_p5), %s244_s29, 64  }
  0x89   : > { %900 = vsyncadd (%p1345_p5), %s244_s29, 4294967232  ;;  %s286_s28 = sand.u32 1, %s911_s13   ;;  %s1218_s5 = scalar_lea.vmem [#allocation7], %s598_s8 }
  0x8a   : > { %s600_s20 = sshll.u32 %s286_s28, 3  ;;  %p601_p3 = scmp.ne.s32.totalorder %s931_s18, 0 }
  0x8b   : > { %s1220_s10 = scalar_lea.vmem [#allocation8], %s600_s20  ;;  %v955_v0 = vmov (!%p601_p3), 0.0  }
  0x8c   : > { %298 = sbr.rel (%p601_p3) target bundleno = 147 (0x93), region = 48  ;;  %299 = vst [vmem:[%s1220_s10] sm:$0xff] (!%p601_p3), %v955_v0 }
  0x93 PF: > { %v302_v1 = vlaneseq  ;;  %v305_v3 = vld [vmem:[%s247_s7] sm:$0x1]  ;;  %v350_v4 = vld [vmem:[%s247_s7 + $0x1] sm:$0x1]  ;;  %v301_v8 = vld [vmem:[%s238_s17 + $0x8] sm:$0xff]  ;;  %v956_v63 = vmov 0.0  }
  0x94   : > { %v300_v7 = vld [vmem:[%s238_s17] sm:$0xff]  ;;  %v335_v11 = vsub.s32 15, %v305_v3  ;;  %v380_v30 = vsub.s32 15, %v350_v4  ;;  %vm417_vm12 = vcmask 1040384   ;;  %vm419_vm13 = vcmask 1041408   ;;  %s607_s18 = sshll.u32 %s935_s19, 7 }
  0x95   : > { %v303_v2 = vshrl.u32 %v302_v1, 7  ;;  %v306_v41 = vld [vmem:[%s1218_s5] sm:$0x1]  ;;  %v351_v53 = vld [vmem:[%s1218_s5 + $0x1] sm:$0x1]  ;;  %vm421_vm14 = vcmask 1042432   ;;  %s1240_s14 = scalar_lea.hbm %s1308_s3, %s607_s18 }
  0x96   : > { %v336_v29 = vcvt.s32.f32 %v335_v11  ;;  %v381_v40 = vcvt.s32.f32 %v380_v30  ;;  %vm307_vm8 = vcmp.eq.s32.totalorder %v306_v41, 1  ;;  %vm352_vm9 = vcmp.eq.s32.totalorder %v351_v53, 1  ;;  %s447_s23 = sshll.u32 %s1220_s10, 4  ;;  %s434_s30 = scalar_lea.sflag [#allocation4], %s286_s28  ;;  %s1242_s23 = int_to_ptr.vmem [resolvable:$true] %s447_s23 }
  0x97   : > { %v304_v5 = vadd.s32 8, %v303_v2  ;;  %v311_v6 = vsub.s32 0, %v303_v2  ;;  %vm308_vm10 = vcmp.eq.s32.totalorder %v306_v41, 0  ;;  %vm353_vm11 = vcmp.eq.s32.totalorder %v351_v53, 0  ;;  %s821_s11 = scalar_lea.vmem %s1242_s23, 128  ;;  %p1346_p8 = scmp.ne.s32.totalorder %s1334_s15, 0 }
  0x98   : > { %v337_v39 = vmul.f32 1e-10, %v336_v29  ;;  %v382_v50 = vmul.f32 1e-10, %v381_v40  ;;  %v602_v0 = vsel %vm308_vm10, 1.0, %v956_v63  ;;  %vm423_vm15 = vcmask 1043456   ;;  %p822_p10 = scmp.ne.s32.totalorder %s1242_s23, %s821_s11 }
  0x99   : > { %v312_v9 = vrot.slane %v305_v3, %v311_v6  ;;  %v357_v10 = vrot.slane %v350_v4, %v311_v6  ;;  %v604_v4 = vsel %vm353_vm11, 1.0, %v956_v63  ;;  %s957_s19 = smov [#allocation8]  }
  0x9a   : > { %p823_p11 = pnand %p822_p10, %p1346_p8  ;;  %s825_s21 = sshll.u32 %s957_s19, 4  ;;  %s826_s21 = int_to_ptr.vmem [resolvable:$false] %s825_s21 }
  0x9b   : > { %vm313_vm0 = vcmp.eq.s32.totalorder %v303_v2, %v312_v9  ;;  %vm314_vm1 = vcmp.eq.s32.totalorder %v304_v5, %v312_v9  ;;  %vm324_vm2 = vcmp.gt.s32.totalorder %v303_v2, %v312_v9  ;;  %vm325_vm3 = vcmp.gt.s32.totalorder %v304_v5, %v312_v9  ;;  %s827_s25 = scalar_lea.vmem %s826_s21, 256  ;;  %p828_p12 = scmp.lt.s32.totalorder %s1242_s23, %s826_s21 }
  0x9c   : > { %v315_v12 = vsel %vm313_vm0, %v300_v7, 0.0  ;;  %v316_v13 = vsel %vm314_vm1, %v301_v8, 0.0  ;;  %v326_v14 = vsel %vm324_vm2, %v300_v7, 0.0  ;;  %v327_v15 = vsel %vm325_vm3, %v301_v8, 0.0  ;;  %p824_p7 = pneg %p823_p11  ;;  %p829_p0 = scmp.lt.s32.totalorder %s827_s25, %s821_s11 }
  0x9d   : > { %v317_v16 = vadd.f32 %v316_v13, %v315_v12  ;;  %v328_v17 = vadd.f32 %v327_v15, %v326_v14  ;;  %vm358_vm4 = vcmp.eq.s32.totalorder %v303_v2, %v357_v10  ;;  %vm359_vm5 = vcmp.eq.s32.totalorder %v304_v5, %v357_v10 }
  0x9e   : > { %v360_v18 = vsel %vm358_vm4, %v300_v7, 0.0  ;;  %v361_v19 = vsel %vm359_vm5, %v301_v8, 0.0  ;;  %vm369_vm6 = vcmp.gt.s32.totalorder %v303_v2, %v357_v10  ;;  %vm370_vm7 = vcmp.gt.s32.totalorder %v304_v5, %v357_v10  ;;  %p830_p1 = por %p829_p0, %p828_p12 }
  0x9f   : > { %v318_v20 = vrot.slane %v317_v16, 4  ;;  %v329_v21 = vrot.slane %v328_v17, 4  ;;  %v362_v22 = vadd.f32 %v361_v19, %v360_v18  ;;  %v371_v23 = vsel %vm369_vm6, %v300_v7, 0.0 }
  0xa0   : > { %v372_v24 = vsel %vm370_vm7, %v301_v8, 0.0  ;;  %v603_v2 = vsel %vm307_vm8, 1.0, %v956_v63  ;;  %v400_v8 = vrot.slane %v602_v0, 6  ;;  %v605_v12 = vsel %vm352_vm9, 1.0, %v956_v63  ;;  %p831_p13 = pnand %p830_p1, %p824_p7 }
  0xa1   : > { %v319_v25 = vadd.f32 %v318_v20, %v317_v16  ;;  %v330_v26 = vadd.f32 %v329_v21, %v328_v17  ;;  %v363_v27 = vrot.slane %v362_v22, 4  ;;  %v373_v28 = vadd.f32 %v372_v24, %v371_v23  ;;  %v395_v23 = vld [vmem:[%s1220_s10] sm:$0xff] }
  0xa2   : > { %v403_v10 = vrot.slane %v603_v2, 5  ;;  %v412_v13 = vrot.slane %v604_v4, 2  ;;  %vm425_vm0 = vcmask 1044480   ;;  %v415_v21 = vrot.slane %v605_v12, 1 }
  0xa3   : > { %v320_v31 = vrot.slane %v319_v25, 2  ;;  %v331_v32 = vrot.slane %v330_v26, 2  ;;  %v364_v33 = vadd.f32 %v363_v27, %v362_v22  ;;  %v374_v34 = vrot.slane %v373_v28, 4 }
  0xa4   : > { %vm427_vm1 = vcmask 1045504   ;;  %vm429_vm2 = vcmask 1046528  }
  0xa5   : > { %v321_v35 = vadd.f32 %v320_v31, %v319_v25  ;;  %v332_v36 = vadd.f32 %v331_v32, %v330_v26  ;;  %v365_v37 = vrot.slane %v364_v33, 2  ;;  %v375_v38 = vadd.f32 %v374_v34, %v373_v28 }
  0xa7   : > { %v322_v42 = vrot.slane %v321_v35, 1  ;;  %v333_v43 = vrot.slane %v332_v36, 1  ;;  %v366_v44 = vadd.f32 %v365_v37, %v364_v33  ;;  %v376_v45 = vrot.slane %v375_v38, 2 }
  0xa9   : > { %v323_v46 = vadd.f32 %v322_v42, %v321_v35  ;;  %v334_v47 = vadd.f32 %v333_v43, %v332_v36  ;;  %v367_v48 = vrot.slane %v366_v44, 1  ;;  %v377_v49 = vadd.f32 %v376_v45, %v375_v38 }
  0xab   : > { %v338_v51 = vadd.f32 %v337_v39, %v334_v47  ;;  %v339_v52 = vadd.f32 1e-10, %v323_v46  ;;  %v368_v54 = vadd.f32 %v367_v48, %v366_v44  ;;  %v378_v55 = vrot.slane %v377_v49, 1 }
  0xad   : > { %v340_v56 = vsel %vm307_vm8, %v338_v51, %v339_v52  ;;  %v379_v57 = vadd.f32 %v378_v55, %v377_v49  ;;  %v384_v58 = vadd.f32 1e-10, %v368_v54 }
  0xae   : > { %727 = vlog2.f32 %v340_v56 }
  0xaf   : > { %v383_v59 = vadd.f32 %v382_v50, %v379_v57 }
  0xb1   : > { %v385_v60 = vsel %vm352_vm9, %v383_v59, %v384_v58 }
  0xb2   : > { %729 = vlog2.f32 %v385_v60 }
  0xb8   : > { %v728_v61 = vpop.eup %727 }
  0xb9   : > { %v342_v62 = vmul.f32 0.6931472, %v728_v61 }
  0xbb   : > { %v343_v1 = vsub.f32 0.0, %v342_v62 }
  0xbc   : > { %v730_v3 = vpop.eup %729 }
  0xbd   : > { %v344_v5 = vsel %vm308_vm10, %v343_v1, 0.0  ;;  %v345_v6 = vsel %vm307_vm8, %v343_v1, 0.0  ;;  %v387_v7 = vmul.f32 0.6931472, %v730_v3 }
  0xbe   : > { %v397_v9 = vrot.slane %v345_v6, 7 }
  0xbf   : > { %v388_v11 = vsub.f32 0.0, %v387_v7 }
  0xc0   : > { %v418_v14 = vsel %vm417_vm12, %v344_v5, %v397_v9 }
  0xc1   : > { %v389_v15 = vsel %vm353_vm11, %v388_v11, 0.0  ;;  %v390_v16 = vsel %vm352_vm9, %v388_v11, 0.0  ;;  %v420_v17 = vsel %vm419_vm13, %v418_v14, %v400_v8 }
  0xc2   : > { %v406_v18 = vrot.slane %v389_v15, 4  ;;  %v409_v19 = vrot.slane %v390_v16, 3  ;;  %v422_v20 = vsel %vm421_vm14, %v420_v17, %v403_v10 }
  0xc4   : > { %v424_v22 = vsel %vm423_vm15, %v422_v20, %v406_v18 }
  0xc5   : > { %v426_v24 = vsel %vm425_vm0, %v424_v22, %v409_v19 }
  0xc6   : > { %v428_v25 = vsel %vm427_vm1, %v426_v24, %v412_v13 }
  0xc7   : > { %v430_v26 = vsel %vm429_vm2, %v428_v25, %v415_v21 }
  0xc8   : > { %v431_v27 = vadd.f32 %v430_v26, %v395_v23 }
  0xca   : > { %432 = vst [vmem:[%s1220_s10] sm:$0xff] %v431_v27 }
  0xcb   : > { %834 = shalt.err (!%p831_p13)
}
  0xcc   : > { %s835_s27 = scalar_lea.hbm %s1240_s14, 128  ;;  %s839_s1 = scalar_lea.hbm %s1308_s3, 256 }
  0xcd   : > { %p836_p2 = scmp.ne.s32.totalorder %s1240_s14, %s835_s27  ;;  %p840_p4 = scmp.lt.u32.totalorder %s1240_s14, %s1308_s3 }
  0xce   : > { %p841_p5 = scmp.lt.u32.totalorder %s839_s1, %s835_s27  ;;  %p843_p10 = scmp.lt.u32.totalorder %s835_s27, %s1240_s14 }
  0xcf   : > { %p837_p6 = pnand %p836_p2, %p1346_p8 }
  0xd0   : > { %p842_p3 = por %p841_p5, %p840_p4 }
  0xd1   : > { %p838_p9 = pneg %p837_p6 }
  0xd2   : > { %p844_p11 = por %p843_p10, %p842_p3 }
  0xd4   : > { %p845_p7 = pnand %p844_p11, %p838_p9 }
  0xd6   : > { %848 = shalt.err (!%p845_p7)
}
  0xd7   : > { %616 = dma.vmem_to_hbm [thread:$0]  (%p1346_p8), %s1242_s23, 128, %s1240_s14, %s434_s30  }
  0xd8 PF: > { %s1347_s17 = sld [smem:[#allocation12_spill]]  ;;  %s1348_s24 = sld [smem:[#allocation21_spill]] }
  0xd9   : > { %p633_p12 = scmp.ge.s32.totalorder %s947_s22, 2 }
  0xde   : > { %s459_s8 = sand.u32 1, %s1347_s17   ;;  %p1349_p0 = scmp.ne.s32.totalorder %s1348_s24, 0 }
  0xdf   : > { %s460_s29 = scalar_lea.sflag [#allocation4], %s459_s8 }
  0xe0   : > { %p629_p1 = pnand %p633_p12, %p1349_p0 }
  0xe2   : > { %902 = dma.done.wait (!%p629_p1), %s460_s29, 128  }
  0xe3   : > { %904 = vsyncadd (!%p629_p1), %s460_s29, 4294967168  ;;  %s22_s22 = sadd.s32 1, %s947_s22   ;;  %s1350_s7 = sld [smem:[#allocation13_spill]] }
  0xe4   : > { %p19_p13 = scmp.ge.s32.totalorder %s22_s22, 6   ;;  %s1351_s14 = sld [smem:[#allocation19_spill]] }
  0xe5   : > { %s1352_s28 = sld [smem:[#allocation14_spill]]  ;;  %s1353_s17 = sld [smem:[#allocation20_spill]] }
  0xe6   : > { %s1354_s18 = sld [smem:[#allocation15_spill]]  ;;  %s1355_s19 = sld [smem:[#allocation16_spill]] }
  0xe7   : > { %s1356_s20 = sld [smem:[#allocation17_spill]]  ;;  %s1357_s21 = sld [smem:[#allocation18_spill]] }
  0xe8   : > { %s1358_s12 = smov %s911_s13  ;;  %s1360_s15 = smov %s923_s16 }
  0xe9   : > { %s1359_s13 = smov %s1350_s7  ;;  %21 = sbr.rel (!%p19_p13) target bundleno = 14 (0xe), region = 105 }
  0xeb   : > { %s1361_s16 = smov %s1352_s28 }
  0xf0   :  { %465 = vsyncpa [#allocation3], 1 }
  0xf1   :  { %467 = vsyncpa [#allocation3 + $0x1], 1 }
  0xf2   :  { %468 = vsyncpa [#allocation6], 1 }
  0xf3   :  { %470 = vsyncpa [#allocation6 + $0x1], 1 }
  0xf4   :  { %471 = vsyncpa [#allocation4], 1 }
  0xf5   :  { %473 = vsyncpa [#allocation4 + $0x1], 1 }

</bundles_post_ra>
